<compile_context>
chip_gen: v6e
topology: v6e:2x2x1
jax: 0.10.0
libtpu: 0.0.40
codegen_flags: <defaults>
</compile_context>

<pallas_src>
import math

import jax
import jax.numpy as jnp
from jax.experimental import pallas as pl
from jax.experimental.pallas import tpu as pltpu


# ---------------------------------------------------------------------------
# Fast path: metadata-only identity (output aliases the input buffer).
# ---------------------------------------------------------------------------
def _touch_kernel(x_ref, o_ref):
    del x_ref                 # nothing to move: output aliases the input buffer
    pltpu.touch(o_ref)        # pin the dependency so the aliased output materializes


def _identity_alias(x):
    return pl.pallas_call(
        _touch_kernel,
        out_shape=jax.ShapeDtypeStruct(x.shape, x.dtype),
        in_specs=[pl.BlockSpec(memory_space=pl.ANY)],
        out_specs=pl.BlockSpec(memory_space=pl.ANY),
        input_output_aliases={0: 0},
    )(x)


# ---------------------------------------------------------------------------
# Fallback path: tiled HBM->VMEM->HBM copy at (near) HBM roofline.
# ---------------------------------------------------------------------------
_LANE_WIDTH = 2048                      # lane-dense last dim (16 x 128 lanes) -> full-width vst
_TARGET_BLOCK_BYTES = 2 * 1024 * 1024   # ~2 MiB per buffer amortizes the ~0.35 us/step overhead
_VMEM_LIMIT_BYTES = 32 * 1024 * 1024    # explicit; safe on v5e/v6e (128 MiB) and v7x (64 MiB)


def _copy_kernel(x_ref, o_ref):
    o_ref[...] = x_ref[...]


def _sublane_multiple(dtype):
    # Sub-32-bit dtypes pack along sublanes: 8 rows (f32), 16 (bf16), 32 (i8/fp8).
    itemsize = jnp.dtype(dtype).itemsize
    return 8 * max(1, 4 // itemsize)


def _identity_copy(x):
    dtype = x.dtype
    total = x.size
    itemsize = jnp.dtype(dtype).itemsize
    sub = _sublane_multiple(dtype)

    flat = jnp.reshape(x, (total,))                       # metadata only
    padded = pl.cdiv(total, _LANE_WIDTH) * _LANE_WIDTH
    if padded != total:                                   # ragged total: pad, copy, slice
        flat = jnp.pad(flat, (0, padded - total))
    rows = padded // _LANE_WIDTH
    slab = jnp.reshape(flat, (rows, _LANE_WIDTH))         # metadata only

    block_r = min(rows, max(sub, _TARGET_BLOCK_BYTES // (_LANE_WIDTH * itemsize)))
    if block_r < rows:
        block_r = max(sub, (block_r // sub) * sub)        # (sublane,128)-legal tile
        grid = (pl.cdiv(rows, block_r),)                  # Pallas handles the partial edge block
    else:
        block_r = rows                                    # full row extent: always legal
        grid = (1,)

    out_slab = pl.pallas_call(
        _copy_kernel,
        out_shape=jax.ShapeDtypeStruct((rows, _LANE_WIDTH), dtype),
        grid=grid,
        in_specs=[pl.BlockSpec((block_r, _LANE_WIDTH), lambda i: (i, 0))],
        out_specs=pl.BlockSpec((block_r, _LANE_WIDTH), lambda i: (i, 0)),
        compiler_params=pltpu.CompilerParams(
            dimension_semantics=("parallel",),            # shard rows across v7x's 2 TCs
            vmem_limit_bytes=_VMEM_LIMIT_BYTES,
        ),
    )(slab)

    out_flat = jnp.reshape(out_slab, (padded,))
    if padded != total:
        out_flat = out_flat[:total]
    return out_flat


# ---------------------------------------------------------------------------
# Public wrapper:  x.reshape(-1, *args)
# ---------------------------------------------------------------------------
_ALIAS_PATH_OK = True  # flipped off if the no-copy kernel fails to lower on this build


def reshape_pallas(x, *args, force_copy=False):
    """Equivalent of torch: x.reshape(-1, *args)."""
    global _ALIAS_PATH_OK

    dims = tuple(int(a) for a in args)
    if any(d <= 0 for d in dims):
        raise ValueError(f"Reshape dims must be positive ints, got {dims}")
    tail = math.prod(dims) if dims else 1
    total = x.size
    if total % tail != 0:
        raise ValueError(f"cannot reshape {total} elements into (-1, {dims})")
    target_shape = (total // tail,) + dims

    if total == 0:
        return jnp.reshape(x, target_shape)

    if force_copy or not _ALIAS_PATH_OK:
        flat = _identity_copy(x)
    else:
        try:
            flat = _identity_alias(x)
        except Exception:
            # Defensive: if the zero-traffic aliased kernel does not lower on
            # this jax/libtpu build, fall back to the roofline tiled copy.
            _ALIAS_PATH_OK = False
            flat = _identity_copy(x)

    return jnp.reshape(flat, target_shape)  # metadata only


if __name__ == "__main__":
    keys = jax.random.split(jax.random.PRNGKey(0), 2)

    # Module instantiated as Reshape(16, 16): forward -> x.reshape(-1, 16, 16)
    args = (16, 16)
    x = jax.random.normal(keys[0], (2, 4, 16, 16), dtype=jnp.float32)
    ref = jnp.reshape(x, (-1,) + args)

    # 1) default path: zero-copy aliased identity
    out = jax.block_until_ready(reshape_pallas(x, *args))
    assert out.shape == ref.shape == (8, 16, 16), out.shape
    assert out.dtype == x.dtype
    assert bool(jnp.array_equal(out, ref)), "alias path mismatch vs reference reshape"

    # 2) explicit tiled-copy path (large lane-dense blocks)
    out_c = jax.block_until_ready(reshape_pallas(x, *args, force_copy=True))
    assert bool(jnp.array_equal(out_c, ref)), "copy path mismatch vs reference reshape"

    # 3) ragged total + bf16 (exercises pad-copy-slice and dtype-aware sublanes)
    y = jax.random.normal(keys[1], (3, 5, 7), dtype=jnp.bfloat16)  # 105 elements
    out_y = jax.block_until_ready(reshape_pallas(y, 7, force_copy=True))
    assert out_y.shape == (15, 7), out_y.shape
    assert bool(jnp.array_equal(out_y, jnp.reshape(y, (-1, 7)))), "ragged copy mismatch"

    print("KERNEL_OK")
</pallas_src>

<mosaic_0001>
module attributes {stable_mosaic.version = 11 : i64} {
  func.func @_touch_kernel(%arg0: memref<2x4x16x16xf32, #tpu.memory_space<any>>, %arg1: memref<2x4x16x16xf32, #tpu.memory_space<any>>) attributes {dimension_semantics = [], scalar_prefetch = 0 : i64, scratch_operands = 0 : i64, tpu.core_type = #tpu.core_type<tc>} {
    return
  }
}

module attributes {stable_mosaic.version = 11 : i64} {
  func.func @_copy_kernel(%arg0: i32, %arg1: memref<1x2048xf32, #tpu.memory_space<vmem>>, %arg2: memref<1x2048xf32, #tpu.memory_space<vmem>>) attributes {dimension_semantics = [#tpu.dimension_semantics<parallel>], iteration_bounds = array<i64: 1>, scalar_prefetch = 0 : i64, scratch_operands = 0 : i64, tpu.core_type = #tpu.core_type<tc>, window_params = [{transform_indices = @transform_0, window_bounds = array<i64: 1, 2048>}, {transform_indices = @transform_1, window_bounds = array<i64: 1, 2048>}]} {
    %c0 = arith.constant 0 : index
    %c0_0 = arith.constant 0 : index
    %0 = vector.load %arg1[%c0, %c0_0] : memref<1x2048xf32, #tpu.memory_space<vmem>>, vector<1x2048xf32>
    %c0_1 = arith.constant 0 : index
    %c0_2 = arith.constant 0 : index
    %1 = vector.load %arg2[%c0_1, %c0_2] : memref<1x2048xf32, #tpu.memory_space<vmem>>, vector<1x2048xf32>
    tpu.vector_store %arg2[%c0_1, %c0_2], %0 {strides = array<i32>} : memref<1x2048xf32, #tpu.memory_space<vmem>>, vector<1x2048xf32>,
    return
  }
  func.func @transform_0(%arg0: i32) -> (i32, i32) {
    %c0_i32 = arith.constant 0 : i32
    %c0_i32_0 = arith.constant 0 : i32
    return %arg0, %c0_i32 : i32, i32
  }
  func.func @transform_1(%arg0: i32) -> (i32, i32) {
    %c0_i32 = arith.constant 0 : i32
    %c0_i32_0 = arith.constant 0 : i32
    return %arg0, %c0_i32 : i32, i32
  }
}

</mosaic_0001>

<bundles_post_ra>
// kernel: tpu_custom_call.1
= control target key start
LH: loop header
LB: loop body
LE: loop exit
PB: predicated region body
PF: predicated region fallthrough
CT: control target
= control target key end

     0   :  { %s16_s0 = inlined_call_operand.hbm [shape: f32[2,4,16,16], index: 0, kind: input, shape index: {}, may-alias: {0,1}]   ;;  %s17_s1 = inlined_call_operand.hbm [shape: f32[2,4,16,16], index: 1, kind: output, shape index: {}, may-alias: {0,1}]  }

// kernel: tpu_custom_call.1
= control target key start
LH: loop header
LB: loop body
LE: loop exit
PB: predicated region body
PF: predicated region fallthrough
CT: control target
= control target key end

     0   :  { %6 = vsyncpa [#allocation3], 0  ;;  %s104_s0 = inlined_call_operand.hbm [shape: f32[1,2048], index: 0, kind: input, shape index: {}]   ;;  %s105_s1 = inlined_call_operand.hbm [shape: f32[1,2048], index: 1, kind: output, shape index: {}]  }
   0x1   :  { %7 = vsyncpa [#allocation4], 0  ;;  %s86_s6 = smov [#allocation2]  }
   0x2   :  { %s14_s7 = sshll.u32 %s86_s6, 4  ;;  %s15_s7 = int_to_ptr.vmem [resolvable:$true] %s14_s7 }
   0x3   :  { %s50_s8 = scalar_lea.vmem %s15_s7, 256  ;;  %p55_p1 = scmp.lt.s32.totalorder %s15_s7, %s15_s7 }
   0x4   :  { %p51_p0 = scmp.ne.s32.totalorder %s15_s7, %s50_s8  ;;  %p56_p2 = scmp.lt.s32.totalorder %s50_s8, %s50_s8 }
   0x6   :  { %p57_p3 = por %p56_p2, %p55_p1 }
   0x8   :  { %p58_p4 = pnand %p57_p3, %p51_p0 }
   0xa   :  { %61 = shalt.err (!%p58_p4)
}
   0xb   :  { %17 = dma.hbm_to_vmem [thread:$0]  %s104_s0, 256, %s15_s7, [#allocation3]  }
   0xc   :  { %82 = dma.done.wait [#allocation3], 256  }
   0xd   :  { %83 = vsyncadd [#allocation3], 4294967040  ;;  %s87_s11 = smov [#allocation5]   ;;  %v21_v0 = vld [vmem:[#allocation2] sm:$0xff]  ;;  %v22_v1 = vld [vmem:[#allocation2 + $0x8] sm:$0xff] }
   0xe   :  { %s31_s12 = sshll.u32 %s87_s11, 4  ;;  %23 = vst [vmem:[#allocation5] sm:$0xff] %v21_v0  ;;  %24 = vst [vmem:[#allocation5 + $0x8] sm:$0xff] %v22_v1  ;;  %s32_s12 = int_to_ptr.vmem [resolvable:$true] %s31_s12 }
   0xf   :  { %s62_s13 = scalar_lea.vmem %s32_s12, 256  ;;  %p67_p6 = scmp.lt.s32.totalorder %s32_s12, %s32_s12 }
  0x10   :  { %p63_p5 = scmp.ne.s32.totalorder %s32_s12, %s62_s13  ;;  %p68_p7 = scmp.lt.s32.totalorder %s62_s13, %s62_s13 }
  0x12   :  { %p69_p8 = por %p68_p7, %p67_p6 }
  0x14   :  { %p70_p9 = pnand %p69_p8, %p63_p5 }
  0x16   :  { %73 = shalt.err (!%p70_p9)
}
  0x17   :  { %34 = dma.vmem_to_hbm [thread:$0]  %s32_s12, 256, %s105_s1, [#allocation4]  }
  0x18   :  { %84 = dma.done.wait [#allocation4], 256  }
  0x19   :  { %85 = vsyncadd [#allocation4], 4294967040 }
  0x1a   :  { %38 = vsyncpa [#allocation3], 1 }
  0x1b   :  { %39 = vsyncpa [#allocation4], 1 }

</bundles_post_ra>
